<compile_context>
chip_gen: v7x
topology: tpu7x:2x2x1
jax: 0.10.0
libtpu: 0.0.40
codegen_flags: <defaults>
</compile_context>

<pallas_src>
import jax
import jax.numpy as jnp
from jax.experimental import pallas as pl
from jax.experimental.pallas import tpu as pltpu

NEG_SLOPE = 0.01  # nn.LeakyReLU() default


def _round_up(n, m):
    return ((n + m - 1) // m) * m


def _cdiv(a, b):
    return -(-a // b)


def _nbytes(a):
    return int(a.size) * a.dtype.itemsize


def _mlp_softmax_kernel(x_ref,
                        w1_ref, b1_ref,
                        w2_ref, b2_ref,
                        w3_ref, b3_ref,
                        o_ref):
    """One batch tile of the fused forward pass.

    x_ref : (TILE_B, in)    f32 or bf16
    wK    : (inK, outK)     f32 or bf16 ; bK : (1, outK) f32
    o_ref : (TILE_B, out)   f32   (softmax over dim=1)
    """
    x = x_ref[...]

    # Layer 1: Linear + LeakyReLU   (Dropout -> identity in eval)
    h = jnp.dot(x, w1_ref[...], preferred_element_type=jnp.float32) + b1_ref[...]
    h = jnp.where(h > 0, h, NEG_SLOPE * h)

    # Layer 2: Linear + LeakyReLU   (cast only the matmul operand; f32 accum)
    h = jnp.dot(h.astype(w2_ref.dtype), w2_ref[...],
                preferred_element_type=jnp.float32) + b2_ref[...]
    h = jnp.where(h > 0, h, NEG_SLOPE * h)

    # Output layer: Linear
    logits = jnp.dot(h.astype(w3_ref.dtype), w3_ref[...],
                     preferred_element_type=jnp.float32) + b3_ref[...]

    # Numerically stable softmax over dim=1 with an EXACT divide so every row
    # sums to 1 to f32 rounding (the approx reciprocal was off by ~1e-3).
    m = jnp.max(logits, axis=1, keepdims=True)
    e = jnp.exp(logits - m)
    denom = jnp.sum(e, axis=1, keepdims=True)
    o_ref[...] = (e / denom).astype(o_ref.dtype)


def _choose_batch_tiling(B, tile_b):
    """Pick (tile, padded_batch) for the batch grid axis.

    Prefers a tile that divides the 8-aligned batch exactly (no wrapper-side
    jnp.pad copy of x) and keeps >= 2 grid steps so v7x megacore can split the
    batch.  Falls back to padding up to a multiple of the tile only when no
    reasonable divisor exists.
    """
    B8 = _round_up(B, 8)
    tile = max(8, min(_round_up(tile_b, 8), B8))
    # At least 2 grid steps (v7x megacore + double-buffering) when worthwhile.
    if B8 >= 16:
        tile = min(tile, _round_up(_cdiv(B8, 2), 8))
    # Largest multiple of 8 in [tile/2, tile] that divides B8 -> no padding.
    t = tile
    while t >= max(8, tile // 2):
        if B8 % t == 0:
            return t, B8
        t -= 8
    # Fallback: pad x up to a multiple of the tile (one extra HBM pass; rare).
    return tile, _round_up(B8, tile)


def base_model_forward(x, params, *, tile_b=8192):
    """Fused MLP + softmax forward.

    params = [(W1, b1), (W2, b2), (W3, b3)] with W: (in, out), b: (out,),
    i.e. the kernel computes x @ W + b (matching PyTorch's x @ W_torch.T + b).
    Pass x (and optionally the weights) in bf16 if the data is natively bf16;
    the kernel accumulates in f32 either way.
    """
    (w1, b1), (w2, b2), (w3, b3) = params
    B, F = x.shape
    out_size = w3.shape[1]

    # Biases as (1, out) f32 so they broadcast over rows in VMEM.
    b1 = b1.reshape(1, -1).astype(jnp.float32)
    b2 = b2.reshape(1, -1).astype(jnp.float32)
    b3 = b3.reshape(1, -1).astype(jnp.float32)

    tile, b_pad = _choose_batch_tiling(B, tile_b)
    if b_pad != B:
        # Only hit when B is not 8-aligned (<=7 rows) or no decent tile divisor
        # exists; note this materializes a padded copy of x in HBM.
        x = jnp.pad(x, ((0, b_pad - B), (0, 0)))

    grid = (b_pad // tile,)

    # Weights/biases: constant index_map -> VMEM resident, no per-step re-DMA.
    const = lambda a: pl.BlockSpec(a.shape, lambda i: (0,) * a.ndim)

    cost = pl.CostEstimate(
        flops=2 * b_pad * (w1.shape[0] * w1.shape[1]
                           + w2.shape[0] * w2.shape[1]
                           + w3.shape[0] * w3.shape[1]),
        transcendentals=b_pad * out_size,                      # exp in softmax
        bytes_accessed=_nbytes(x) + b_pad * out_size * 4
                       + sum(_nbytes(a) for a in (w1, b1, w2, b2, w3, b3)),
    )

    out = pl.pallas_call(
        _mlp_softmax_kernel,
        out_shape=jax.ShapeDtypeStruct((b_pad, out_size), jnp.float32),
        grid=grid,
        in_specs=[pl.BlockSpec((tile, F), lambda i: (i, 0)),
                  const(w1), const(b1),
                  const(w2), const(b2),
                  const(w3), const(b3)],
        out_specs=pl.BlockSpec((tile, out_size), lambda i: (i, 0)),
        compiler_params=pltpu.CompilerParams(
            dimension_semantics=("parallel",)),   # megacore-shard the batch axis
        cost_estimate=cost,
    )(x, w1, b1, w2, b2, w3, b3)

    return out[:B] if b_pad != B else out


def init_params(key, input_size, hidden_sizes, output_size):
    """Deterministic synthetic init (Kaiming-uniform-ish, like PyTorch defaults)."""
    sizes = [input_size] + list(hidden_sizes) + [output_size]
    params = []
    for fan_in, fan_out in zip(sizes[:-1], sizes[1:]):
        key, kw, kb = jax.random.split(key, 3)
        bound = 1.0 / jnp.sqrt(fan_in)
        w = jax.random.uniform(kw, (fan_in, fan_out), jnp.float32, -bound, bound)
        b = jax.random.uniform(kb, (fan_out,), jnp.float32, -bound, bound)
        params.append((w, b))
    return params


def reference_forward(x, params):
    (w1, b1), (w2, b2), (w3, b3) = params
    h = x @ w1 + b1
    h = jnp.where(h > 0, h, NEG_SLOPE * h)
    h = h @ w2 + b2
    h = jnp.where(h > 0, h, NEG_SLOPE * h)
    logits = h @ w3 + b3
    return jax.nn.softmax(logits, axis=1)


if __name__ == "__main__":
    # ModelConfig(input_size=32, hidden_sizes=[32, 64], output_size=5)
    INPUT_SIZE = 32
    HIDDEN_SIZES = [32, 64]
    OUTPUT_SIZE = 5

    key = jax.random.PRNGKey(0)
    key_x1, key_x2, key_x3, key_p = jax.random.split(key, 4)
    params = init_params(key_p, INPUT_SIZE, HIDDEN_SIZES, OUTPUT_SIZE)

    # Case 1: tiny spec-sized batch -- single grid step.
    x_small = jax.random.normal(key_x1, (8, INPUT_SIZE), jnp.float32)
    out_small = jax.block_until_ready(base_model_forward(x_small, params))
    ref_small = reference_forward(x_small, params)
    assert out_small.shape == (8, OUTPUT_SIZE)
    assert jnp.allclose(out_small, ref_small, atol=1e-3, rtol=1e-3), "f32 small mismatch"
    assert jnp.allclose(jnp.sum(out_small, axis=1), 1.0, atol=1e-3), "rows must sum to 1"

    # Case 2: batch not 8-aligned -> exercises the small tail pad + 2-step grid
    # (304 rows split as 2 x 152 for the "parallel" batch axis).
    x_big = jax.random.normal(key_x2, (300, INPUT_SIZE), jnp.float32)
    out_big = jax.block_until_ready(base_model_forward(x_big, params))
    ref_big = reference_forward(x_big, params)
    assert out_big.shape == (300, OUTPUT_SIZE)
    assert jnp.allclose(out_big, ref_big, atol=1e-3, rtol=1e-3), "f32 tiled mismatch"
    assert jnp.allclose(jnp.sum(out_big, axis=1), 1.0, atol=1e-3)

    # Case 3: divisor-tiling path (256 rows, tile 64 -> 4 steps, no padding).
    x_mid = jax.random.normal(key_x3, (256, INPUT_SIZE), jnp.float32)
    out_mid = jax.block_until_ready(base_model_forward(x_mid, params, tile_b=64))
    ref_mid = reference_forward(x_mid, params)
    assert jnp.allclose(out_mid, ref_mid, atol=1e-3, rtol=1e-3), "f32 multi-step mismatch"

    # Case 4: natively-bf16 input and weights (no wrapper-side cast), looser tol.
    params_bf16 = [(w.astype(jnp.bfloat16), b) for (w, b) in params]
    x_bf16 = x_big.astype(jnp.bfloat16)
    out_bf16 = jax.block_until_ready(base_model_forward(x_bf16, params_bf16))
    assert jnp.allclose(out_bf16, ref_big, atol=5e-2, rtol=5e-2), "bf16 mismatch"
    assert jnp.allclose(jnp.sum(out_bf16, axis=1), 1.0, atol=1e-3)

    print("KERNEL_OK")
</pallas_src>

<mosaic_0001>
module attributes {stable_mosaic.version = 11 : i64} {
  func.func @_mlp_softmax_kernel(%arg0: i32, %arg1: memref<8x32xf32, #tpu.memory_space<vmem>>, %arg2: memref<32x32xf32, #tpu.memory_space<vmem>>, %arg3: memref<1x32xf32, #tpu.memory_space<vmem>>, %arg4: memref<32x64xf32, #tpu.memory_space<vmem>>, %arg5: memref<1x64xf32, #tpu.memory_space<vmem>>, %arg6: memref<64x5xf32, #tpu.memory_space<vmem>>, %arg7: memref<1x5xf32, #tpu.memory_space<vmem>>, %arg8: memref<8x5xf32, #tpu.memory_space<vmem>>) attributes {dimension_semantics = [#tpu.dimension_semantics<parallel>], iteration_bounds = array<i64: 1>, scalar_prefetch = 0 : i64, scratch_operands = 0 : i64, tpu.core_type = #tpu.core_type<tc>, window_params = [{transform_indices = @transform_0, window_bounds = array<i64: 8, 32>}, {pipeline_mode = #tpu.pipeline_mode<synchronous>, transform_indices = @transform_1, window_bounds = array<i64: 32, 32>}, {pipeline_mode = #tpu.pipeline_mode<synchronous>, transform_indices = @transform_2, window_bounds = array<i64: 1, 32>}, {pipeline_mode = #tpu.pipeline_mode<synchronous>, transform_indices = @transform_3, window_bounds = array<i64: 32, 64>}, {pipeline_mode = #tpu.pipeline_mode<synchronous>, transform_indices = @transform_4, window_bounds = array<i64: 1, 64>}, {pipeline_mode = #tpu.pipeline_mode<synchronous>, transform_indices = @transform_5, window_bounds = array<i64: 64, 5>}, {pipeline_mode = #tpu.pipeline_mode<synchronous>, transform_indices = @transform_6, window_bounds = array<i64: 1, 5>}, {transform_indices = @transform_7, window_bounds = array<i64: 8, 5>}]} {
    %c0 = arith.constant 0 : index
    %c0_0 = arith.constant 0 : index
    %0 = vector.load %arg1[%c0, %c0_0] : memref<8x32xf32, #tpu.memory_space<vmem>>, vector<8x32xf32>
    %c0_1 = arith.constant 0 : index
    %c0_2 = arith.constant 0 : index
    %1 = vector.load %arg2[%c0_1, %c0_2] : memref<32x32xf32, #tpu.memory_space<vmem>>, vector<32x32xf32>
    %cst = arith.constant dense<0.000000e+00> : vector<8x32xf32>
    %2 = tpu.matmul %0, %1, %cst {dimension_numbers = #tpu.dot_dimension_numbers<[1], [0], [0], [1], [0, 0, 1, 1], [], []>} : vector<8x32xf32>, vector<32x32xf32>, vector<8x32xf32> -> vector<8x32xf32>
    %c0_3 = arith.constant 0 : index
    %c0_4 = arith.constant 0 : index
    %3 = vector.load %arg3[%c0_3, %c0_4] : memref<1x32xf32, #tpu.memory_space<vmem>>, vector<1x32xf32>
    %4 = vector.broadcast %3 : vector<1x32xf32> to vector<8x32xf32>
    %5 = arith.addf %2, %4 : vector<8x32xf32>
    %cst_5 = arith.constant 0.000000e+00 : f32
    %6 = vector.broadcast %cst_5 : f32 to vector<8x32xf32>
    %7 = arith.cmpf ogt, %5, %6 : vector<8x32xf32>
    %cst_6 = arith.constant 0.00999999977 : f32
    %8 = vector.broadcast %cst_6 : f32 to vector<8x32xf32>
    %9 = arith.mulf %8, %5 : vector<8x32xf32>
    %10 = arith.select %7, %5, %9 : vector<8x32xi1>, vector<8x32xf32>
    %c0_7 = arith.constant 0 : index
    %c0_8 = arith.constant 0 : index
    %11 = vector.load %arg4[%c0_7, %c0_8] : memref<32x64xf32, #tpu.memory_space<vmem>>, vector<32x64xf32>
    %cst_9 = arith.constant dense<0.000000e+00> : vector<8x64xf32>
    %12 = tpu.matmul %10, %11, %cst_9 {dimension_numbers = #tpu.dot_dimension_numbers<[1], [0], [0], [1], [0, 0, 1, 1], [], []>} : vector<8x32xf32>, vector<32x64xf32>, vector<8x64xf32> -> vector<8x64xf32>
    %c0_10 = arith.constant 0 : index
    %c0_11 = arith.constant 0 : index
    %13 = vector.load %arg5[%c0_10, %c0_11] : memref<1x64xf32, #tpu.memory_space<vmem>>, vector<1x64xf32>
    %14 = vector.broadcast %13 : vector<1x64xf32> to vector<8x64xf32>
    %15 = arith.addf %12, %14 : vector<8x64xf32>
    %cst_12 = arith.constant 0.000000e+00 : f32
    %16 = vector.broadcast %cst_12 : f32 to vector<8x64xf32>
    %17 = arith.cmpf ogt, %15, %16 : vector<8x64xf32>
    %cst_13 = arith.constant 0.00999999977 : f32
    %18 = vector.broadcast %cst_13 : f32 to vector<8x64xf32>
    %19 = arith.mulf %18, %15 : vector<8x64xf32>
    %20 = arith.select %17, %15, %19 : vector<8x64xi1>, vector<8x64xf32>
    %c0_14 = arith.constant 0 : index
    %c0_15 = arith.constant 0 : index
    %21 = vector.load %arg6[%c0_14, %c0_15] : memref<64x5xf32, #tpu.memory_space<vmem>>, vector<64x5xf32>
    %cst_16 = arith.constant dense<0.000000e+00> : vector<8x5xf32>
    %22 = tpu.matmul %20, %21, %cst_16 {dimension_numbers = #tpu.dot_dimension_numbers<[1], [0], [0], [1], [0, 0, 1, 1], [], []>} : vector<8x64xf32>, vector<64x5xf32>, vector<8x5xf32> -> vector<8x5xf32>
    %c0_17 = arith.constant 0 : index
    %c0_18 = arith.constant 0 : index
    %23 = vector.load %arg7[%c0_17, %c0_18] : memref<1x5xf32, #tpu.memory_space<vmem>>, vector<1x5xf32>
    %24 = vector.broadcast %23 : vector<1x5xf32> to vector<8x5xf32>
    %25 = arith.addf %22, %24 : vector<8x5xf32>
    %cst_19 = arith.constant dense<0xFF800000> : vector<8xf32>
    %26 = vector.multi_reduction <maximumf>, %25, %cst_19 [1] : vector<8x5xf32> to vector<8xf32>
    %27 = vector.shape_cast %26 : vector<8xf32> to vector<8x1xf32>
    %28 = vector.broadcast %27 : vector<8x1xf32> to vector<8x5xf32>
    %29 = arith.subf %25, %28 : vector<8x5xf32>
    %30 = math.exp %29 : vector<8x5xf32>
    %cst_20 = arith.constant dense<0.000000e+00> : vector<8xf32>
    %31 = vector.multi_reduction <add>, %30, %cst_20 [1] : vector<8x5xf32> to vector<8xf32>
    %32 = vector.shape_cast %31 : vector<8xf32> to vector<8x1xf32>
    %33 = vector.broadcast %32 : vector<8x1xf32> to vector<8x5xf32>
    %34 = arith.divf %30, %33 : vector<8x5xf32>
    %c0_21 = arith.constant 0 : index
    %c0_22 = arith.constant 0 : index
    %35 = vector.load %arg8[%c0_21, %c0_22] : memref<8x5xf32, #tpu.memory_space<vmem>>, vector<8x5xf32>
    tpu.vector_store %arg8[%c0_21, %c0_22], %34 {strides = array<i32>} : memref<8x5xf32, #tpu.memory_space<vmem>>, vector<8x5xf32>,
    return
  }
  func.func @transform_0(%arg0: i32) -> (i32, i32) {
    %c0_i32 = arith.constant 0 : i32
    %c0_i32_0 = arith.constant 0 : i32
    return %arg0, %c0_i32 : i32, i32
  }
  func.func @transform_1(%arg0: i32) -> (i32, i32) {
    %c0_i32 = arith.constant 0 : i32
    %c0_i32_0 = arith.constant 0 : i32
    %c0_i32_1 = arith.constant 0 : i32
    return %c0_i32, %c0_i32_0 : i32, i32
  }
  func.func @transform_2(%arg0: i32) -> (i32, i32) {
    %c0_i32 = arith.constant 0 : i32
    %c0_i32_0 = arith.constant 0 : i32
    %c0_i32_1 = arith.constant 0 : i32
    return %c0_i32, %c0_i32_0 : i32, i32
  }
  func.func @transform_3(%arg0: i32) -> (i32, i32) {
    %c0_i32 = arith.constant 0 : i32
    %c0_i32_0 = arith.constant 0 : i32
    %c0_i32_1 = arith.constant 0 : i32
    return %c0_i32, %c0_i32_0 : i32, i32
  }
  func.func @transform_4(%arg0: i32) -> (i32, i32) {
    %c0_i32 = arith.constant 0 : i32
    %c0_i32_0 = arith.constant 0 : i32
    %c0_i32_1 = arith.constant 0 : i32
    return %c0_i32, %c0_i32_0 : i32, i32
  }
  func.func @transform_5(%arg0: i32) -> (i32, i32) {
    %c0_i32 = arith.constant 0 : i32
    %c0_i32_0 = arith.constant 0 : i32
    %c0_i32_1 = arith.constant 0 : i32
    return %c0_i32, %c0_i32_0 : i32, i32
  }
  func.func @transform_6(%arg0: i32) -> (i32, i32) {
    %c0_i32 = arith.constant 0 : i32
    %c0_i32_0 = arith.constant 0 : i32
    %c0_i32_1 = arith.constant 0 : i32
    return %c0_i32, %c0_i32_0 : i32, i32
  }
  func.func @transform_7(%arg0: i32) -> (i32, i32) {
    %c0_i32 = arith.constant 0 : i32
    %c0_i32_0 = arith.constant 0 : i32
    return %arg0, %c0_i32 : i32, i32
  }
}

</mosaic_0001>

<bundles_post_ra>
// kernel: tpu_custom_call.1
= control target key start
LH: loop header
LB: loop body
LE: loop exit
PB: predicated region body
PF: predicated region fallthrough
CT: control target
= control target key end

     0   :  { %v441_v3 = vmov 0.0|0.0   ;;  %vm442_vm0 = vmmov 0   ;;  %v443_v6 = vmov 0.0   ;;  %s565_s0 = inlined_call_operand.vmem [shape: f32[8,32], index: 0, kind: input, shape index: {}]   ;;  %s566_s1 = inlined_call_operand.vmem [shape: f32[32,32], index: 1, kind: input, shape index: {}]   ;;  %s567_s2 = inlined_call_operand.vmem [shape: f32[1,32], index: 2, kind: input, shape index: {}]   ;;  %s568_s3 = inlined_call_operand.vmem [shape: f32[32,64], index: 3, kind: input, shape index: {}]   ;;  %s569_s4 = inlined_call_operand.vmem [shape: f32[1,64], index: 4, kind: input, shape index: {}]   ;;  %s570_s5 = inlined_call_operand.vmem [shape: f32[64,5], index: 5, kind: input, shape index: {}]   ;;  %s571_s6 = inlined_call_operand.vmem [shape: f32[1,5], index: 6, kind: input, shape index: {}]   ;;  %s572_s7 = inlined_call_operand.hbm [shape: f32[8,5], index: 7, kind: output, shape index: {}]  }
   0x1   :  { %v28_v0 = vld [vmem:[%s566_s1] sm:$0xff]  ;;  %v29_v1 = vld [vmem:[%s566_s1 + $0x8] sm:$0xff]  ;;  %v30_v2 = vld [vmem:[%s566_s1 + $0x10] sm:$0xff]  ;;  %385 = vmatprep.subr.bf16.mxu1 %v441_v3  ;;  %352 = vmatprep.mubr.msk.f32.mxu1 %vm442_vm0, %v443_v6 }
   0x2   :  { %v386_v4 = vpack.c.bf16 %v29_v1, %v28_v0  ;;  %v31_v5 = vld [vmem:[%s566_s1 + $0x18] sm:$0xff]  ;;  %397 = vmatprep.subr.bf16.mxu0 %v441_v3  ;;  %382 = vmatprep.mubr.msk.f32.mxu0 %vm442_vm0, %v443_v6 }
   0x3   :  { %12 = vsyncpa [#allocation3], 0  ;;  %v389_v7 = vpack.c.bf16 %v31_v5, %v30_v2  ;;  %v116_v8 = vld [vmem:[%s568_s3] sm:$0xff]  ;;  %v117_v9 = vld [vmem:[%s568_s3 + $0x8] sm:$0xff]  ;;  %vm39_vm1 = vcmask 261120   ;;  %vm218_vm4 = vcmask 523264  }
   0x4   :  { %387 = vmatpush3.bf16.msra.mxu1 %v386_v4  ;;  %v27_v10 = vld [vmem:[%s565_s0] sm:$0xff]  ;;  %v392_v11 = vpack.c.bf16 %v117_v9, %v116_v8  ;;  %v118_v12 = vld [vmem:[%s568_s3 + $0x10] sm:$0xff]  ;;  %v119_v13 = vld [vmem:[%s568_s3 + $0x18] sm:$0xff]  ;;  %vm292_vm5 = vcmask 39936  }
   0x5   :  { %388 = vmatprep.subr.bf16.mxu1 %v441_v3  ;;  %v395_v14 = vpack.c.bf16 %v119_v13, %v118_v12  ;;  %v203_v15 = vld [vmem:[%s570_s5] sm:$0xff]  ;;  %v204_v16 = vld [vmem:[%s570_s5 + $0x8] sm:$0xff]  ;;  %v205_v17 = vld [vmem:[%s570_s5 + $0x10] sm:$0xff] }
   0x6   :  { %v398_v18 = vpack.c.bf16 %v204_v16, %v203_v15  ;;  %v206_v19 = vld [vmem:[%s570_s5 + $0x18] sm:$0xff]  ;;  %v207_v21 = vld [vmem:[%s570_s5 + $0x20] sm:$0xff]  ;;  %v208_v22 = vld [vmem:[%s570_s5 + $0x28] sm:$0xff] }
   0x7   :  { %v401_v20 = vpack.c.bf16 %v206_v19, %v205_v17  ;;  %v404_v23 = vpack.c.bf16 %v208_v22, %v207_v21  ;;  %v319_v24 = vld [vmem:[%s567_s2] ss:$0 sm:$0xff]  ;;  %v209_v30 = vld [vmem:[%s570_s5 + $0x30] sm:$0xff]  ;;  %v210_v31 = vld [vmem:[%s570_s5 + $0x38] sm:$0xff] }
   0x8   :  { %390 = vmatpush3.bf16.msra.mxu1 %v389_v7  ;;  %399 = vmatpush3.bf16.msra.mxu0 %v398_v18  ;;  %v407_v32 = vpack.c.bf16 %v210_v31, %v209_v30  ;;  %v321_v33 = vld [vmem:[%s569_s4] ss:$0 sm:$0xff]  ;;  %s444_s4 = smov [#allocation2]  }
   0x9   :  { %391 = vmatprep.subr.bf16.mxu1 %v441_v3  ;;  %400 = vmatprep.subr.bf16.mxu0 %v441_v3  ;;  %v323_v39 = vld [vmem:[%s571_s6] ss:$0 sm:$0xff]  ;;  %s311_s5 = sshll.u32 %s444_s4, 4  ;;  %s312_s5 = int_to_ptr.vmem [resolvable:$true] %s311_s5 }
   0xa   :  { %s417_s6 = scalar_lea.vmem %s312_s5, 128  ;;  %p422_p1 = scmp.lt.s32.totalorder %s312_s5, %s312_s5 }
   0xb   :  { %353 = vmatmul.mubr.msk.f32.vlgmr.msra.gmra.mrb[0].mxu1 %vm39_vm1, %v27_v10  ;;  %p418_p0 = scmp.ne.s32.totalorder %s312_s5, %s417_s6  ;;  %p423_p2 = scmp.lt.s32.totalorder %s417_s6, %s417_s6 }
   0xc   :  { %393 = vmatpush3.bf16.msra.mxu1 %v392_v11  ;;  %363 = vmatprep.mubr.msk.f32.mxu1 %vm442_vm0, %v443_v6 }
   0xd   :  { %394 = vmatprep.subr.bf16.mxu1 %v441_v3  ;;  %402 = vmatpush3.bf16.msra.mxu0 %v401_v20  ;;  %p424_p3 = por %p423_p2, %p422_p1 }
   0xe   :  { %403 = vmatprep.subr.bf16.mxu0 %v441_v3 }
   0xf   :  { %p425_p4 = pnand %p424_p3, %p418_p0 }
  0x10   :  { %396 = vmatpush3.bf16.msra.mxu1 %v395_v14 }
  0x11   :  { %405 = vmatpush3.bf16.msra.mxu0 %v404_v23 }
  0x12   :  { %406 = vmatprep.subr.bf16.mxu0 %v441_v3 }
  0x15   :  { %408 = vmatpush3.bf16.msra.mxu0 %v407_v32 }
  0xde   :  { %v109_v25 = vpop.f32.mrb[0].mxu1 }
  0xdf   :  { %v110_v26 = vadd.f32 %v319_v24, %v109_v25  ;;  %v354_v27 = vpop.f32.mrb[1].mxu1 }
  0xe1   :  { %vm113_vm2 = vcmp.gt.f32.partialorder %v110_v26, 0.0  ;;  %v114_v28 = vmul.f32 0.01, %v110_v26 }
  0xe3   :  { %v115_v29 = vsel %vm113_vm2, %v110_v26, %v114_v28 }
  0xe4   :  { %364 = vmatmul.mubr.msk.f32.vlgmr.msra.gmra.mrb[2].mxu1 %vm39_vm1, %v115_v29 }
 0x1b7   :  { %v196_v34 = vpop.f32.mrb[2].mxu1 }
 0x1b8   :  { %v197_v35 = vadd.f32 %v321_v33, %v196_v34  ;;  %v365_v36 = vpop.f32.mrb[3].mxu1 }
 0x1ba   :  { %vm200_vm3 = vcmp.gt.f32.partialorder %v197_v35, 0.0  ;;  %v201_v37 = vmul.f32 0.01, %v197_v35 }
 0x1bc   :  { %v202_v38 = vsel %vm200_vm3, %v197_v35, %v201_v37 }
 0x1bd   :  { %383 = vmatmul.mubr.msk.f32.vlgmr.msra.gmra.mrb[0].mxu0 %vm218_vm4, %v202_v38 }
 0x290   :  { %v288_v40 = vpop.f32.mrb[0].mxu0 }
 0x291   :  { %v289_v41 = vadd.f32 %v323_v39, %v288_v40  ;;  %v384_v42 = vpop.f32.mrb[1].mxu0 }
 0x293   :  { %v293_v43 = vsel %vm292_vm5, %v289_v41, -inf }
 0x294   :  { %294 = vmax.xlane.f32.xlu0 %v293_v43 }
 0x321   :  { %v295_v44 = vpop.xlane.xlu0 %294 }
 0x322   :  { %v296_v45 = vsub.f32 %v289_v41, %v295_v44 }
 0x324   :  { %v297_v46 = vmul.f32 1.442695, %v296_v45 }
 0x326   :  { %413 = vpow2.f32 %v297_v46 }
 0x330   :  { %v414_v47 = vpop.eup %413 }
 0x331   :  { %v299_v48 = vsel %vm292_vm5, %v414_v47, 0.0 }
 0x332   :  { %300 = vadd.xlane.f32.xlu0 %v299_v48 }
 0x3bf   :  { %v301_v49 = vpop.xlane.xlu0 %300 }
 0x3c0   :  { %415 = vrcp.f32 %v301_v49 }
 0x3ca   :  { %v416_v50 = vpop.eup %415 }
 0x3cb   :  { %v303_v51 = vmul.f32 %v416_v50, %v414_v47 }
 0x3cd   :  { %304 = vst.msk [vmem:[#allocation2] sm:$0xff] %vm292_vm5, %v303_v51 }
 0x3ce   :  { %428 = shalt.err (!%p425_p4)
}
 0x3cf   :  { %s429_s15 = scalar_lea.hbm %s572_s7, 128 }
 0x3d0   :  { %p430_p5 = scmp.ne.s32.totalorder %s572_s7, %s429_s15  ;;  %p433_p6 = scmp.lt.u32.totalorder %s429_s15, %s572_s7 }
 0x3d2   :  { %p435_p7 = pnand %p433_p6, %p430_p5 }
 0x3d4   :  { %438 = shalt.err (!%p435_p7)
}
 0x3d5   :  { %314 = dma.vmem_to_hbm [thread:$0]  %s312_s5, 128, %s572_s7, [#allocation3]  }
 0x3d6   :  { %439 = dma.done.wait [#allocation3], 128  }
 0x3d7   :  { %440 = vsyncadd [#allocation3], 4294967168 }
 0x3d8   :  { %318 = vsyncpa [#allocation3], 1 }

</bundles_post_ra>
